<compile_context>
chip_gen: v5e
topology: v5e:2x2
jax: 0.10.0
libtpu: 0.0.40
codegen_flags: <defaults>
</compile_context>

<pallas_src>
import functools

import jax
import jax.numpy as jnp
import numpy as np
from jax.experimental import pallas as pl
from jax.experimental.pallas import tpu as pltpu

INPUT_DIM = 1      # the module hard-codes input_dim = 1
HIDDEN1 = 12
OUTPUT_DIM = 32    # the module's `output_dim` ctor arg
BATCH = 8

_LANES = 128
_SUBLANES = 8


def _round_up(x, m):
    return ((x + m - 1) // m) * m


# ---------------------------------------------------------------------------
# Parameter packing (host side, once, outside the hot path).
#
# Packed f32 matrix of shape (Wp + Hp, 128), all slices 8-sublane aligned,
# laid out for the transposed (batch-on-lanes) compute:
#   rows [0, Wp):
#     cols [0, Hp)   : w2^T  (output_dim x hidden), zero-padded to (Wp, Hp)
#     col  Hp        : b2 as a column
#     col  Hp + 1    : w3[:, 0] as a column
#   rows [Wp, Wp+Hp):
#     col 0          : w1[0, :] as a column (zero-padded)
#     col 1          : b1 as a column (zero-padded)
#   p[Wp, 2]         : b3 scalar
# ---------------------------------------------------------------------------
def pack_params(w1, b1, w2, b2, w3, b3):
    hidden, width = w2.shape
    assert w1.shape == (1, hidden)
    assert w3.shape == (width, 1)
    hp = _round_up(hidden, _SUBLANES)
    wp = _round_up(width, _SUBLANES)
    cols = _LANES
    assert cols >= hp + 2, "packed layout needs hp + 2 <= 128 lanes"

    p = jnp.zeros((wp + hp, cols), jnp.float32)
    p = p.at[0:width, 0:hidden].set(jnp.asarray(w2, jnp.float32).T)
    p = p.at[0:width, hp].set(jnp.asarray(b2, jnp.float32).reshape(width))
    p = p.at[0:width, hp + 1].set(jnp.asarray(w3, jnp.float32).reshape(width))
    p = p.at[wp:wp + hidden, 0].set(jnp.asarray(w1, jnp.float32).reshape(hidden))
    p = p.at[wp:wp + hidden, 1].set(jnp.asarray(b1, jnp.float32).reshape(hidden))
    p = p.at[wp, 2].set(jnp.asarray(b3, jnp.float32).reshape(()))
    return p


# ---------------------------------------------------------------------------
# Kernel: one lane-dense batch tile of the whole MLP (batch on lanes).
# ---------------------------------------------------------------------------
def _critic_kernel(s_ref, p_ref, o_ref, *, hp, wp):
    # s_ref: (1, TB)   p_ref: (Wp + Hp, 128)   o_ref: (1, TB)   all f32
    s = s_ref[...]                              # (1, TB), batch on lanes
    p = p_ref[...]

    w2t    = p[0:wp, 0:hp]                      # (Wp, Hp)
    b2_col = p[0:wp, hp:hp + 1]                 # (Wp, 1)
    w3_col = p[0:wp, hp + 1:hp + 2]             # (Wp, 1)
    w1_col = p[wp:wp + hp, 0:1]                 # (Hp, 1)
    b1_col = p[wp:wp + hp, 1:2]                 # (Hp, 1)
    b3     = p[wp:wp + 1, 2:3]                  # (1, 1)

    # fc1 (K == 1): outer product on the VPU; s broadcasts along sublanes.
    h1 = jnp.maximum(w1_col * s + b1_col, 0.0)                       # (Hp, TB)

    # fc1_1: the only real matmul -> MXU, batch sits on the N/lane dim.
    h2 = jnp.dot(w2t, h1,
                 preferred_element_type=jnp.float32,
                 precision=jax.lax.Precision.HIGHEST)                # (Wp, TB)
    h2 = jnp.maximum(h2 + b2_col, 0.0)

    # fc2 (N == 1): VPU multiply + sublane reduction (XLU).
    y = jnp.sum(w3_col * h2, axis=0, keepdims=True) + b3             # (1, TB)

    o_ref[...] = y.astype(o_ref.dtype)                               # lane-dense store


# ---------------------------------------------------------------------------
# Wrapper: batch-gridded pallas_call; weights stay VMEM-resident across grid.
# ---------------------------------------------------------------------------
def _choose_tile(batch, block_b):
    # Batch sits on the 128-wide lane axis -> tiles are multiples of 128.
    bp_min = _round_up(max(batch, 1), _LANES)
    if bp_min >= 2 * _LANES:
        # Aim for >= 2 grid steps so the "parallel" axis can shard across the
        # two TensorCores on v7x, capped at block_b to stay amortized.
        tb = min(_round_up(block_b, _LANES),
                 _round_up(pl.cdiv(bp_min, 2), _LANES))
    else:
        tb = bp_min
    bp = _round_up(bp_min, tb)
    return tb, bp


def critic_forward(s, packed_params, *, hidden=HIDDEN1, block_b=512):
    """Pallas path. s: (B, 1) f32 -> (B, 1) f32."""
    B, in_dim = s.shape
    assert in_dim == 1, "Critic_model is built with input_dim = 1"
    rows, cols = packed_params.shape
    hp = _round_up(hidden, _SUBLANES)
    wp = rows - hp

    tb, bp = _choose_tile(B, block_b)

    # Batch on lanes: present s as a lane-dense (1, Bp) row (padded rows are
    # garbage after the MLP but are sliced off below; output is never aliased).
    s_row = jnp.pad(s.astype(jnp.float32).reshape(1, B), ((0, 0), (0, bp - B)))

    kernel = functools.partial(_critic_kernel, hp=hp, wp=wp)

    out = pl.pallas_call(
        kernel,
        out_shape=jax.ShapeDtypeStruct((1, bp), jnp.float32),
        grid_spec=pltpu.PrefetchScalarGridSpec(
            num_scalar_prefetch=0,
            grid=(bp // tb,),
            in_specs=[
                # per-tile lane-dense state row
                pl.BlockSpec((1, tb), lambda i: (0, i)),
                # packed params: full array, same block every grid step
                # -> DMA'd once and kept VMEM-resident.
                pl.BlockSpec((rows, cols), lambda i: (0, 0)),
            ],
            out_specs=pl.BlockSpec((1, tb), lambda i: (0, i)),
        ),
        compiler_params=pltpu.CompilerParams(
            dimension_semantics=("parallel",),  # both TCs on v7x for >=2 tiles
        ),
    )(s_row, packed_params)

    return out.reshape(bp, 1)[:B]


def critic_apply(s, params, packed_params, *, min_pallas_batch=256, block_b=512):
    """Dispatcher: tiny batches -> plain XLA fusion (the Pallas call is pure
    fixed overhead at B ~ 8); batched/production shapes -> Pallas kernel."""
    if s.shape[0] < min_pallas_batch:
        return reference_forward(s, *params)
    return critic_forward(s, packed_params, block_b=block_b)


# ---------------------------------------------------------------------------
# Init + pure-JAX reference (true f32 math, matching PyTorch semantics).
# ---------------------------------------------------------------------------
def init_params(key, input_dim, output_dim):
    # PyTorch Linear default init: U(-1/sqrt(fan_in), 1/sqrt(fan_in)).
    # Weights stored pre-transposed as (in_features, out_features).
    def linear(k, fan_in, fan_out):
        kw, kb = jax.random.split(k)
        bound = 1.0 / np.sqrt(fan_in)
        w = jax.random.uniform(kw, (fan_in, fan_out), jnp.float32, -bound, bound)
        b = jax.random.uniform(kb, (1, fan_out), jnp.float32, -bound, bound)
        return w, b

    k1, k2, k3 = jax.random.split(key, 3)
    w1, b1 = linear(k1, input_dim, HIDDEN1)
    w2, b2 = linear(k2, HIDDEN1, output_dim)
    w3, b3 = linear(k3, output_dim, 1)
    return w1, b1, w2, b2, w3, b3


def reference_forward(s, w1, b1, w2, b2, w3, b3):
    hi = jax.lax.Precision.HIGHEST
    h1 = jnp.maximum(jnp.dot(s, w1, precision=hi) + b1, 0.0)
    h2 = jnp.maximum(jnp.dot(h1, w2, precision=hi) + b2, 0.0)
    return jnp.dot(h2, w3, precision=hi) + b3


if __name__ == "__main__":
    key = jax.random.PRNGKey(0)
    k_in, k_params = jax.random.split(key)

    w1, b1, w2, b2, w3, b3 = init_params(k_params, INPUT_DIM, OUTPUT_DIM)
    packed = pack_params(w1, b1, w2, b2, w3, b3)

    # Small (spec-sized) batch: exercise the Pallas kernel directly.
    s_small = jax.random.normal(k_in, (BATCH, INPUT_DIM), jnp.float32)
    out_small = jax.block_until_ready(critic_forward(s_small, packed))
    ref_small = reference_forward(s_small, w1, b1, w2, b2, w3, b3)
    assert out_small.shape == (BATCH, 1)
    np.testing.assert_allclose(np.asarray(out_small), np.asarray(ref_small),
                               rtol=1e-5, atol=1e-5)

    # Batched shape: multi-tile grid (>= 2 grid steps -> both TCs on v7x).
    s_big = jax.random.normal(k_in, (640, INPUT_DIM), jnp.float32)
    out_big = jax.block_until_ready(critic_forward(s_big, packed, block_b=512))
    ref_big = reference_forward(s_big, w1, b1, w2, b2, w3, b3)
    assert out_big.shape == (640, 1)
    np.testing.assert_allclose(np.asarray(out_big), np.asarray(ref_big),
                               rtol=1e-5, atol=1e-5)

    print("KERNEL_OK")
</pallas_src>

<mosaic_0001>
module attributes {stable_mosaic.version = 11 : i64} {
  func.func @_critic_kernel(%arg0: i32, %arg1: memref<1x128xf32, #tpu.memory_space<vmem>>, %arg2: memref<48x128xf32, #tpu.memory_space<vmem>>, %arg3: memref<1x128xf32, #tpu.memory_space<vmem>>) attributes {dimension_semantics = [#tpu.dimension_semantics<parallel>], iteration_bounds = array<i64: 1>, scalar_prefetch = 0 : i64, scratch_operands = 0 : i64, tpu.core_type = #tpu.core_type<tc>, window_params = [{transform_indices = @transform_0, window_bounds = array<i64: 1, 128>}, {pipeline_mode = #tpu.pipeline_mode<synchronous>, transform_indices = @transform_1, window_bounds = array<i64: 48, 128>}, {transform_indices = @transform_2, window_bounds = array<i64: 1, 128>}]} {
    %c0 = arith.constant 0 : index
    %c0_0 = arith.constant 0 : index
    %0 = vector.load %arg1[%c0, %c0_0] : memref<1x128xf32, #tpu.memory_space<vmem>>, vector<1x128xf32>
    %c0_1 = arith.constant 0 : index
    %c0_2 = arith.constant 0 : index
    %1 = vector.load %arg2[%c0_1, %c0_2] : memref<48x128xf32, #tpu.memory_space<vmem>>, vector<48x128xf32>
    %2 = vector.extract_strided_slice %1 {offsets = [0, 0], sizes = [32, 16], strides = [1, 1]} : vector<48x128xf32> to vector<32x16xf32>
    %3 = vector.extract_strided_slice %1 {offsets = [0, 16], sizes = [32, 1], strides = [1, 1]} : vector<48x128xf32> to vector<32x1xf32>
    %4 = vector.extract_strided_slice %1 {offsets = [0, 17], sizes = [32, 1], strides = [1, 1]} : vector<48x128xf32> to vector<32x1xf32>
    %5 = vector.extract_strided_slice %1 {offsets = [32, 0], sizes = [16, 1], strides = [1, 1]} : vector<48x128xf32> to vector<16x1xf32>
    %6 = vector.extract_strided_slice %1 {offsets = [32, 1], sizes = [16, 1], strides = [1, 1]} : vector<48x128xf32> to vector<16x1xf32>
    %7 = vector.extract_strided_slice %1 {offsets = [32, 2], sizes = [1, 1], strides = [1, 1]} : vector<48x128xf32> to vector<1x1xf32>
    %8 = vector.broadcast %5 : vector<16x1xf32> to vector<16x128xf32>
    %9 = vector.broadcast %0 : vector<1x128xf32> to vector<16x128xf32>
    %10 = arith.mulf %8, %9 : vector<16x128xf32>
    %11 = vector.broadcast %6 : vector<16x1xf32> to vector<16x128xf32>
    %12 = arith.addf %10, %11 : vector<16x128xf32>
    %cst = arith.constant 0.000000e+00 : f32
    %13 = vector.broadcast %cst : f32 to vector<16x128xf32>
    %14 = arith.maximumf %12, %13 : vector<16x128xf32>
    %cst_3 = arith.constant dense<0.000000e+00> : vector<32x128xf32>
    %15 = tpu.matmul %2, %14, %cst_3 {dimension_numbers = #tpu.dot_dimension_numbers<[1], [0], [0], [1], [0, 0, 1, 1], [], []>, precision = #tpu.contract_precision<fp32>} : vector<32x16xf32>, vector<16x128xf32>, vector<32x128xf32> -> vector<32x128xf32>
    %16 = vector.broadcast %3 : vector<32x1xf32> to vector<32x128xf32>
    %17 = arith.addf %15, %16 : vector<32x128xf32>
    %cst_4 = arith.constant 0.000000e+00 : f32
    %18 = vector.broadcast %cst_4 : f32 to vector<32x128xf32>
    %19 = arith.maximumf %17, %18 : vector<32x128xf32>
    %20 = vector.broadcast %4 : vector<32x1xf32> to vector<32x128xf32>
    %21 = arith.mulf %20, %19 : vector<32x128xf32>
    %cst_5 = arith.constant dense<0.000000e+00> : vector<128xf32>
    %22 = vector.multi_reduction <add>, %21, %cst_5 [0] : vector<32x128xf32> to vector<128xf32>
    %23 = vector.shape_cast %22 : vector<128xf32> to vector<1x128xf32>
    %24 = vector.broadcast %7 : vector<1x1xf32> to vector<1x128xf32>
    %25 = arith.addf %23, %24 : vector<1x128xf32>
    %c0_6 = arith.constant 0 : index
    %c0_7 = arith.constant 0 : index
    %26 = vector.load %arg3[%c0_6, %c0_7] : memref<1x128xf32, #tpu.memory_space<vmem>>, vector<1x128xf32>
    tpu.vector_store %arg3[%c0_6, %c0_7], %25 {strides = array<i32>} : memref<1x128xf32, #tpu.memory_space<vmem>>, vector<1x128xf32>,
    return
  }
  func.func @transform_0(%arg0: i32) -> (i32, i32) {
    %c0_i32 = arith.constant 0 : i32
    %c0_i32_0 = arith.constant 0 : i32
    return %c0_i32, %arg0 : i32, i32
  }
  func.func @transform_1(%arg0: i32) -> (i32, i32) {
    %c0_i32 = arith.constant 0 : i32
    %c0_i32_0 = arith.constant 0 : i32
    %c0_i32_1 = arith.constant 0 : i32
    return %c0_i32, %c0_i32_0 : i32, i32
  }
  func.func @transform_2(%arg0: i32) -> (i32, i32) {
    %c0_i32 = arith.constant 0 : i32
    %c0_i32_0 = arith.constant 0 : i32
    return %c0_i32, %arg0 : i32, i32
  }
}

</mosaic_0001>

<bundles_post_ra>
// kernel: tpu_custom_call.1
= control target key start
LH: loop header
LB: loop body
LE: loop exit
PB: predicated region body
PF: predicated region fallthrough
CT: control target
= control target key end

     0   :  { %7 = vsyncpa [#allocation3], 0  ;;  %s623_s0 = inlined_call_operand.hbm [shape: f32[1,128], index: 0, kind: input, shape index: {}]   ;;  %s624_s1 = inlined_call_operand.hbm [shape: f32[48,128], index: 1, kind: input, shape index: {}]   ;;  %s625_s2 = inlined_call_operand.hbm [shape: f32[1,128], index: 2, kind: output, shape index: {}]  }
   0x1   :  { %8 = vsyncpa [#allocation6], 0 }
   0x2   :  { %9 = vsyncpa [#allocation4], 0  ;;  %s15_s11 = sshll.u32 %s623_s0, 4  ;;  %s517_s12 = smov [#allocation2]   ;;  %s16_s11 = int_to_ptr.hbm [resolvable:$true] %s15_s11 }
   0x3   :  { %s17_s13 = sshll.u32 %s517_s12, 4  ;;  %s25_s16 = sshll.u32 %s624_s1, 4  ;;  %s18_s13 = int_to_ptr.vmem [resolvable:$true] %s17_s13  ;;  %s26_s16 = int_to_ptr.hbm [resolvable:$true] %s25_s16 }
   0x4   :  { %20 = dma.hbm_to_vmem [thread:$0]  %s16_s11, 16, %s18_s13, [#allocation3]  }
   0x5   :  { %s518_s17 = smov [#allocation5]   ;;  %s519_s19 = smov 128  }
   0x6   :  { %s27_s18 = sshll.u32 %s518_s17, 4  ;;  %s520_s20 = smov 8   ;;  %s28_s18 = int_to_ptr.vmem [resolvable:$true] %s27_s18 }
   0x7   :  { %33 = dma.hbm_to_vmem [thread:$0]  %s26_s16, 768, %s28_s18, [#allocation6], %s519_s19, %s519_s19, %s520_s20  }
   0x8   :  { %511 = dma.done.wait [#allocation3], 16  }
   0x9   :  { %512 = vsyncadd [#allocation3], 4294967280 }
   0xa   :  { %513 = dma.done.wait [#allocation6], 768  }
   0xb   :  { %514 = vsyncadd [#allocation6], 4294966528  ;;  %v521_v0 = vmov 1   ;;  %v522_v1 = vmov 0   ;;  %v48_v2 = vld [vmem:[#allocation5 + $0x28] sm:$0xff]  ;;  %v548_v3 = vld [vmem:[#allocation5 + $0x20] sm:$0xff] }
   0xc   :  { %429 = vset.pattern.permute.xlu1 %v521_v0  ;;  %428 = vset.pattern.permute.xlu0 %v522_v1  ;;  %v552_v4 = vld [vmem:[#allocation5 + $0x10] sm:$0xff]  ;;  %vm96_vm0 = vcmask 130048   ;;  %v554_v5 = vld [vmem:[#allocation5] sm:$0xff]  ;;  %v438_v7 = vld [vmem:[#allocation2] ss:$0 sm:$0xff]  ;;  %v523_v20 = vmov 16  }
   0xd   :  { %69 = vperm.xlu1 %429, %v48_v2   ;;  %56 = vperm.xlu0 %428, %v48_v2   ;;  %v101_v6 = vsel %vm96_vm0, %v552_v4, 0  ;;  %v97_v8 = vsel %vm96_vm0, %v554_v5, 0  ;;  %v564_v14 = vld [vmem:[#allocation5 + $0x18] sm:$0xff]  ;;  %v566_v15 = vld [vmem:[#allocation5 + $0x8] sm:$0xff]  ;;  %v524_v54 = vmov 17   ;;  %v525_v55 = vmov 2  }
   0xe   :  { %v560_v9 = vand.u32 4294901760, %v101_v6  ;;  %v562_v12 = vand.u32 4294901760, %v97_v8  ;;  %v103_v18 = vsel %vm96_vm0, %v564_v14, 0  ;;  %v99_v22 = vsel %vm96_vm0, %v566_v15, 0  ;;  %430 = vset.pattern.permute.xlu2 %v523_v20  ;;  %s526_s0 = smov [#allocation7]   ;;  %s403_s23 = sshll.u32 %s625_s2, 4  ;;  %s404_s23 = int_to_ptr.hbm [resolvable:$true] %s403_s23 }
   0xf   :  { %v581_v25 = vand.u32 4294901760, %v103_v18  ;;  %78 = vperm.xlu2 %430, %v554_v5   ;;  %v585_v28 = vand.u32 4294901760, %v99_v22  ;;  %s401_s1 = sshll.u32 %s526_s0, 4  ;;  %s402_s1 = int_to_ptr.vmem [resolvable:$true] %s401_s1 }
  0x10   :  { %v569_v17 = vsub.f32 %v101_v6, %v560_v9  ;;  %v574_v19 = vsub.f32 %v97_v8, %v562_v12 }
  0x11   :  { %v591_v35 = vsub.f32 %v103_v18, %v581_v25  ;;  %v132_v37 = vsub.f32 %v99_v22, %v585_v28 }
  0x12   :  { %v141_v24 = vand.u32 4294901760, %v569_v17  ;;  %v125_v27 = vand.u32 4294901760, %v574_v19 }
  0x13   :  { %v149_v43 = vand.u32 4294901760, %v591_v35  ;;  %v133_v45 = vand.u32 4294901760, %v132_v37 }
  0x14   :  { %v142_v34 = vsub.f32 %v569_v17, %v141_v24  ;;  %v126_v36 = vsub.f32 %v574_v19, %v125_v27 }
  0x15   :  { %65 = vperm.xlu1 %429, %v548_v3   ;;  %51 = vperm.xlu0 %428, %v548_v3   ;;  %v150_v48 = vsub.f32 %v591_v35, %v149_v43  ;;  %v134_v49 = vsub.f32 %v132_v37, %v133_v45 }
  0x16   :  { %v143_v42 = vand.u32 4294901760, %v142_v34  ;;  %v127_v44 = vand.u32 4294901760, %v126_v36 }
  0x17   :  { %83 = vperm.xlu2 %430, %v566_v15   ;;  %v151_v52 = vand.u32 4294901760, %v150_v48  ;;  %v135_v53 = vand.u32 4294901760, %v134_v49 }
  0x1d   :  { %431 = vset.pattern.permute.xlu0 %v523_v20  ;;  %432 = vset.pattern.permute.xlu1 %v523_v20 }
  0x1e   :  { %88 = vperm.xlu0 %431, %v552_v4   ;;  %93 = vperm.xlu1 %432, %v564_v14  }
  0x1f   :  { %433 = vset.pattern.permute.xlu2 %v524_v54 }
  0x20   :  { %362 = vperm.xlu2 %433, %v554_v5  }
  0x26   :  { %434 = vset.pattern.permute.xlu1 %v524_v54  ;;  %435 = vset.pattern.permute.xlu0 %v524_v54 }
  0x27   :  { %366 = vperm.xlu1 %434, %v566_v15   ;;  %374 = vperm.xlu0 %435, %v564_v14  }
  0x28   :  { %370 = vperm.xlu2 %433, %v552_v4  }
  0x2f   :  { %436 = vset.pattern.permute.xlu1 %v525_v55  ;;  %437 = vset.pattern.permute.xlu0 %v525_v55 }
  0x30   :  { %391 = vperm.xlu1 %436, %v548_v3  }
  0x69   :  { %v79_v63 = vpop.permute.xlu2 %78 }
  0x71   :  { %v84_v4 = vpop.permute.xlu2 %83 }
  0x7f   :  { %v70_v10 = vpop.permute.xlu1 %69  ;;  %v57_v11 = vpop.permute.xlu0 %56 }
  0x80   :  { %v63_v13 = vmul.f32 %v438_v7, %v57_v11 }
  0x82   :  { %v73_v16 = vadd.f32 %v70_v10, %v63_v13 }
  0x84   :  { %v75_v21 = vmax.f32 %v73_v16, 0.0 }
  0x86   :  { %v119_v23 = vand.u32 4294901760, %v75_v21 }
  0x87   :  { %v52_v26 = vpop.permute.xlu0 %51  ;;  %v66_v31 = vpop.permute.xlu1 %65 }
  0x88   :  { %v171_v29 = vsub.f32 %v75_v21, %v119_v23  ;;  %v62_v30 = vmul.f32 %v438_v7, %v52_v26  ;;  %120 = vmatpush.msra.mxu0 %v119_v23  ;;  %414 = vmatpush.msra.mxu2 %v119_v23 }
  0x8a   :  { %v72_v32 = vadd.f32 %v66_v31, %v62_v30  ;;  %v172_v33 = vand.u32 4294901760, %v171_v29 }
  0x8c   :  { %v74_v38 = vmax.f32 %v72_v32, 0.0  ;;  %v173_v39 = vsub.f32 %v171_v29, %v172_v33 }
  0x8e   :  { %v121_v40 = vand.u32 4294901760, %v74_v38  ;;  %v174_v41 = vand.u32 4294901760, %v173_v39 }
  0x90   :  { %122 = vmatpush.msra.mxu0 %v121_v40  ;;  %415 = vmatpush.msra.mxu2 %v121_v40  ;;  %v177_v46 = vsub.f32 %v74_v38, %v121_v40  ;;  %v89_v10 = vpop.permute.xlu0 %88  ;;  %v94_v22 = vpop.permute.xlu1 %93 }
  0x91   :  { %175 = vmatpush.msra.mxu1 %v174_v41  ;;  %416 = vmatpush.msra.mxu3 %v174_v41 }
  0x92   :  { %144 = vmatmul.f32.vlgmr.msra.gmra.mxu2 %v143_v42  ;;  %300 = vmatpush.msrb.mxu0 %v172_v33  ;;  %v178_v47 = vand.u32 4294901760, %v177_v46  ;;  %v363_v33 = vpop.permute.xlu2 %362 }
  0x93   :  { %215 = vmatpush.msrb.mxu2 %v171_v29  ;;  %128 = vmatmul.f32.vlgmr.msra.gmra.mxu0 %v127_v44 }
  0x94   :  { %304 = vmatpush.msrb.mxu0 %v178_v47  ;;  %v179_v50 = vsub.f32 %v177_v46, %v178_v47 }
  0x95   :  { %218 = vmatpush.msrb.mxu2 %v177_v46 }
  0x96   :  { %v180_v51 = vand.u32 4294901760, %v179_v50 }
  0x98   :  { %181 = vmatpush.msra.mxu1 %v180_v51  ;;  %417 = vmatpush.msra.mxu3 %v180_v51 }
  0x99   :  { %191 = vmatmul.f32.vlgmr.msra.gmra.mxu3 %v560_v9  ;;  %183 = vmatmul.f32.vlgmr.msra.gmra.mxu1 %v562_v12  ;;  %v367_v39 = vpop.permute.xlu1 %366 }
  0x9a   :  { %337 = vmatpush.msrb.mxu1 %v119_v23  ;;  %152 = vmatmul.f32.gmra.mxu2 %v151_v52  ;;  %v371_v49 = vpop.permute.xlu2 %370 }
  0x9b   :  { %255 = vmatpush.msrb.mxu3 %v119_v23  ;;  %136 = vmatmul.f32.gmra.mxu0 %v135_v53  ;;  %v375_v53 = vpop.permute.xlu0 %374 }
  0x9c   :  { %339 = vmatpush.msrb.mxu1 %v121_v40 }
  0x9d   :  { %257 = vmatpush.msrb.mxu3 %v121_v40 }
  0xa1   :  { %195 = vmatmul.f32.gmra.mxu3 %v581_v25  ;;  %187 = vmatmul.f32.gmra.mxu1 %v585_v28 }
  0xa2   :  { %221 = vmatmul.f32.vlgmr.msrb.gmra.mxu2 %v574_v19 }
  0xa3   :  { %306 = vmatmul.f32.vlgmr.msrb.gmra.mxu0 %v562_v12 }
  0xa9   :  { %261 = vmatmul.f32.vlgmr.msrb.gmra.mxu3 %v125_v27  ;;  %341 = vmatmul.f32.vlgmr.msrb.gmra.mxu1 %v562_v12 }
  0xaa   :  { %226 = vmatmul.f32.gmra.mxu2 %v132_v37 }
  0xab   :  { %310 = vmatmul.f32.gmra.mxu0 %v585_v28 }
  0xb1   :  { %267 = vmatmul.f32.gmra.mxu3 %v133_v45  ;;  %345 = vmatmul.f32.gmra.mxu1 %v585_v28 }
  0xb2   :  { %231 = vmatmul.f32.gmra.mxu2 %v569_v17 }
  0xb3   :  { %314 = vmatmul.f32.gmra.mxu0 %v560_v9 }
  0xb9   :  { %273 = vmatmul.f32.gmra.mxu3 %v141_v24  ;;  %349 = vmatmul.f32.gmra.mxu1 %v560_v9 }
  0xba   :  { %236 = vmatmul.f32.gmra.mxu2 %v591_v35 }
  0xbb   :  { %318 = vmatmul.f32.gmra.mxu0 %v581_v25 }
  0xc1   :  { %279 = vmatmul.f32.gmra.mxu3 %v149_v43  ;;  %353 = vmatmul.f32.gmra.mxu1 %v581_v25 }
 0x110   :  { %v129_v56 = vpop.f32.mrf.mxu0 }
 0x111   :  { %v130_v9 = vadd.f32 %v129_v56, %v79_v63 }
 0x115   :  { %v145_v57 = vpop.f32.mrf.mxu2 }
 0x116   :  { %v184_v58 = vpop.f32.mrf.mxu1  ;;  %v146_v14 = vadd.f32 %v145_v57, %v89_v10 }
 0x117   :  { %v185_v15 = vadd.f32 %v184_v58, %v130_v9 }
 0x118   :  { %v137_v60 = vpop.f32.mrf.mxu0 }
 0x119   :  { %v138_v7 = vadd.f32 %v137_v60, %v84_v4 }
 0x11c   :  { %v192_v59 = vpop.f32.mrf.mxu3 }
 0x11d   :  { %v153_v61 = vpop.f32.mrf.mxu2  ;;  %v193_v20 = vadd.f32 %v192_v59, %v146_v14 }
 0x11e   :  { %v188_v62 = vpop.f32.mrf.mxu1  ;;  %v154_v28 = vadd.f32 %v153_v61, %v94_v22 }
 0x11f   :  { %v189_v12 = vadd.f32 %v188_v62, %v138_v7 }
 0x120   :  { %v307_v2 = vpop.f32.mrf.mxu0 }
 0x124   :  { %v196_v0 = vpop.f32.mrf.mxu3 }
 0x125   :  { %v222_v1 = vpop.f32.mrf.mxu2  ;;  %v197_v35 = vadd.f32 %v196_v0, %v154_v28  ;;  %v392_v0 = vpop.permute.xlu1 %391 }
 0x126   :  { %v342_v3 = vpop.f32.mrf.mxu1  ;;  %v223_v18 = vadd.f32 %v222_v1, %v185_v15 }
 0x128   :  { %v311_v8 = vpop.f32.mrf.mxu0 }
 0x12c   :  { %v262_v5 = vpop.f32.mrf.mxu3 }
 0x12d   :  { %v227_v6 = vpop.f32.mrf.mxu2  ;;  %v263_v21 = vadd.f32 %v262_v5, %v223_v18 }
 0x12e   :  { %v346_v11 = vpop.f32.mrf.mxu1  ;;  %v228_v16 = vadd.f32 %v227_v6, %v189_v12 }
 0x12f   :  { %v308_v29 = vadd.f32 %v307_v2, %v263_v21 }
 0x130   :  { %v315_v23 = vpop.f32.mrf.mxu0 }
 0x131   :  { %v343_v36 = vadd.f32 %v342_v3, %v308_v29 }
 0x133   :  { %v357_v43 = vmax.f32 %v343_v36, 0.0 }
 0x134   :  { %v268_v13 = vpop.f32.mrf.mxu3 }
 0x135   :  { %v232_v17 = vpop.f32.mrf.mxu2  ;;  %v269_v19 = vadd.f32 %v268_v13, %v228_v16  ;;  %v377_v50 = vmul.f32 %v363_v33, %v357_v43 }
 0x136   :  { %v233_v24 = vadd.f32 %v232_v17, %v193_v20  ;;  %v350_v27 = vpop.f32.mrf.mxu1 }
 0x137   :  { %v312_v25 = vadd.f32 %v311_v8, %v269_v19 }
 0x138   :  { %v319_v42 = vpop.f32.mrf.mxu0 }
 0x139   :  { %v347_v31 = vadd.f32 %v346_v11, %v312_v25 }
 0x13b   :  { %v358_v38 = vmax.f32 %v347_v31, 0.0 }
 0x13c   :  { %v274_v26 = vpop.f32.mrf.mxu3 }
 0x13d   :  { %v275_v30 = vadd.f32 %v274_v26, %v233_v24  ;;  %v237_v34 = vpop.f32.mrf.mxu2  ;;  %v378_v47 = vmul.f32 %v367_v39, %v358_v38 }
 0x13e   :  { %v238_v40 = vadd.f32 %v237_v34, %v197_v35  ;;  %v354_v46 = vpop.f32.mrf.mxu1 }
 0x13f   :  { %v316_v32 = vadd.f32 %v315_v23, %v275_v30  ;;  %v381_v54 = vadd.f32 %v378_v47, %v377_v50 }
 0x141   :  { %v351_v37 = vadd.f32 %v350_v27, %v316_v32 }
 0x143   :  { %v359_v44 = vmax.f32 %v351_v37, 0.0 }
 0x144   :  { %v280_v41 = vpop.f32.mrf.mxu3 }
 0x145   :  { %v281_v45 = vadd.f32 %v280_v41, %v238_v40  ;;  %v379_v51 = vmul.f32 %v371_v49, %v359_v44 }
 0x147   :  { %v320_v48 = vadd.f32 %v319_v42, %v281_v45  ;;  %v382_v56 = vadd.f32 %v381_v54, %v379_v51 }
 0x149   :  { %v355_v52 = vadd.f32 %v354_v46, %v320_v48 }
 0x14b   :  { %v360_v55 = vmax.f32 %v355_v52, 0.0 }
 0x14d   :  { %v380_v57 = vmul.f32 %v375_v53, %v360_v55 }
 0x14f   :  { %v383_v58 = vadd.f32 %v382_v56, %v380_v57 }
 0x151   :  { %v384_v59 = vrot.slane %v383_v58, 4 }
 0x153   :  { %v385_v60 = vadd.f32 %v384_v59, %v383_v58 }
 0x155   :  { %v386_v61 = vrot.slane %v385_v60, 2 }
 0x157   :  { %v387_v62 = vadd.f32 %v386_v61, %v385_v60 }
 0x159   :  { %v388_v63 = vrot.slane %v387_v62, 1 }
 0x15b   :  { %v389_v1 = vadd.f32 %v388_v63, %v387_v62 }
 0x15d   :  { %v394_v2 = vadd.f32 %v392_v0, %v389_v1 }
 0x15f   :  { %395 = vst [vmem:[#allocation7] sm:$0x1] %v394_v2 }
 0x160   :  { %406 = dma.vmem_to_hbm [thread:$0]  %s402_s1, 16, %s404_s23, [#allocation4]  }
 0x161   :  { %515 = dma.done.wait [#allocation4], 16  }
 0x162   :  { %516 = vsyncadd [#allocation4], 4294967280 }
 0x163   :  { %411 = vsyncpa [#allocation3], 1 }
 0x164   :  { %412 = vsyncpa [#allocation6], 1 }
 0x165   :  { %413 = vsyncpa [#allocation4], 1 }

</bundles_post_ra>
